<compile_context>
chip_gen: v7x
topology: tpu7x:2x2x1
jax: 0.10.0
libtpu: 0.0.40
codegen_flags: <defaults>
</compile_context>

<pallas_src>
import functools

import jax
import jax.numpy as jnp
from jax.experimental import pallas as pl
from jax.experimental.pallas import tpu as pltpu

HIDDEN = 64        # logical hidden width (as in the PyTorch module)
HIDDEN_PAD = 128   # lane-dense padded hidden width


def _round_up(x, m):
    return ((x + m - 1) // m) * m


def _pad2d(a, rows, cols):
    a = a.astype(jnp.float32)
    return jnp.pad(a, ((0, rows - a.shape[0]), (0, cols - a.shape[1])))


def _phys_bytes(rows, cols, itemsize=4):
    """Physical VMEM footprint of an f32 (rows, cols) buffer under (8,128) tiling."""
    return _round_up(max(rows, 1), 8) * _round_up(max(cols, 1), 128) * itemsize


def _vmem_budget():
    """Scoped-VMEM budget: leave headroom below the chip's physical capacity."""
    cap = 64 << 20                       # conservative fallback == v7x physical
    try:
        info = pltpu.get_tpu_info()
        cap = int(getattr(info, "vmem_capacity_bytes", cap))
    except Exception:
        pass
    # ~48 MiB on v7x (64 MiB phys), ~96-100 MiB on v5e/v6e (128 MiB phys).
    return max(min(cap * 3 // 4, 100 << 20), 48 << 20)


# --------------------------------------------------------------------------- #
# Kernels
# --------------------------------------------------------------------------- #
def _mlp_logits(x, w1_ref, b1_ref, w2_ref, b2_ref, w3_ref, b3_ref):
    """fc1+relu, fc2+relu, out-layer logits.  All MXU matmuls accumulate in f32."""
    h1 = jnp.dot(x, w1_ref[...], preferred_element_type=jnp.float32) + b1_ref[...]
    h1 = jnp.maximum(h1, 0.0)
    h2 = jnp.dot(h1, w2_ref[...], preferred_element_type=jnp.float32) + b2_ref[...]
    h2 = jnp.maximum(h2, 0.0)
    return jnp.dot(h2, w3_ref[...], preferred_element_type=jnp.float32) + b3_ref[...]


def _mask_padded_rows(logits, i, tb, b_actual):
    """Set rows >= b_actual (batch padding, last tile only) to -inf."""
    row_ids = jax.lax.broadcasted_iota(jnp.int32, logits.shape, 0) + i * tb
    return jnp.where(row_ids < b_actual, logits, -jnp.inf)


def _resident_softmax_kernel(x_ref, w1_ref, b1_ref, w2_ref, b2_ref, w3_ref, b3_ref,
                             o_ref, *, tb, b_actual, need_mask):
    """Single-pass design: logits accumulate into a VMEM-resident (b_pad, out_pad)
    buffer; the dim-0 softmax (couples ALL batch rows) runs once on the last step."""
    i = pl.program_id(0)
    logits = _mlp_logits(x_ref[...], w1_ref, b1_ref, w2_ref, b2_ref, w3_ref, b3_ref)

    if need_mask:                         # static: only emitted if batch was padded
        logits = _mask_padded_rows(logits, i, tb, b_actual)

    row0 = pl.multiple_of(i * tb, tb)
    o_ref[pl.ds(row0, tb), :] = logits

    @pl.when(i == pl.num_programs(0) - 1)
    def _finalize():
        z = o_ref[...]                                    # (b_pad, out_pad)
        m = jnp.max(z, axis=0, keepdims=True)
        e = jnp.exp(z - m)                                # exp(-inf)=0 for padded rows
        s = jnp.sum(e, axis=0, keepdims=True)
        o_ref[...] = e * pl.reciprocal(s, approx=False)


def _logits_partials_kernel(x_ref, w1_ref, b1_ref, w2_ref, b2_ref, w3_ref, b3_ref,
                            logits_ref, pmax_ref, psum_ref, *, tb, b_actual, need_mask):
    """Two-pass design, pass 1 ("parallel"): per-tile logits to HBM + per-tile
    column max and sum-of-exp partials (online-softmax style)."""
    i = pl.program_id(0)
    logits = _mlp_logits(x_ref[...], w1_ref, b1_ref, w2_ref, b2_ref, w3_ref, b3_ref)

    if need_mask:
        logits = _mask_padded_rows(logits, i, tb, b_actual)

    logits_ref[...] = logits
    m = jnp.max(logits, axis=0, keepdims=True)                      # (1, out_pad)
    s = jnp.sum(jnp.exp(logits - m), axis=0, keepdims=True)         # (1, out_pad)
    pmax_ref[...] = jnp.broadcast_to(m, pmax_ref.shape)             # (8, out_pad)
    psum_ref[...] = jnp.broadcast_to(s, psum_ref.shape)


def _normalize_kernel(logits_ref, m_ref, inv_s_ref, o_ref):
    """Two-pass design, pass 2 ("parallel"): out = exp(logit - m) / S."""
    o_ref[...] = jnp.exp(logits_ref[...] - m_ref[...]) * inv_s_ref[...]


# --------------------------------------------------------------------------- #
# Wrapper
# --------------------------------------------------------------------------- #
def prepare_params(params):
    """Pad weights/biases ONCE (lane-dense zero padding == mathematical no-op).
    Note: w1's K (input) dim is left UNPADDED so x can stream unpadded."""
    w1, b1, w2, b2, w3, b3 = params
    in_size = w1.shape[0]
    out_pad = _round_up(max(w3.shape[1], 1), 128)
    return (
        _pad2d(w1, in_size, HIDDEN_PAD),        # (in_size, 128)
        _pad2d(b1, 1, HIDDEN_PAD),
        _pad2d(w2, HIDDEN_PAD, HIDDEN_PAD),     # (128, 128)
        _pad2d(b2, 1, HIDDEN_PAD),
        _pad2d(w3, HIDDEN_PAD, out_pad),        # (128, out_pad)
        _pad2d(b3, 1, out_pad),
    )


@functools.partial(jax.jit, static_argnames=("output_size", "tb", "force_two_pass"))
def network_forward(x, prepared, *, output_size, tb=512, force_two_pass=False):
    """Forward pass of `Network`.  x: (B, input_size) f32; prepared = prepare_params(...).
    Returns (B, output_size) f32, softmax taken over dim 0 (the batch axis)."""
    w1p, b1p, w2p, b2p, w3p, b3p = prepared
    B, in_size = x.shape
    assert w1p.shape[0] == in_size
    out_pad = w3p.shape[1]

    # ---- batch tiling (lane dim of x stays unpadded) ------------------------
    tb = min(_round_up(tb, 8), _round_up(B, 8))
    b_pad = _round_up(B, tb)
    nt = b_pad // tb
    need_mask = b_pad > B

    xp = x.astype(jnp.float32)
    if need_mask:
        xp = jnp.pad(xp, ((0, b_pad - B), (0, 0)))       # batch-dim pad only

    # ---- VMEM accounting (physical tiled sizes, x2 buffers per block) -------
    weight_bytes = 2 * (_phys_bytes(in_size, HIDDEN_PAD) + _phys_bytes(1, HIDDEN_PAD)
                        + _phys_bytes(HIDDEN_PAD, HIDDEN_PAD) + _phys_bytes(1, HIDDEN_PAD)
                        + _phys_bytes(HIDDEN_PAD, out_pad) + _phys_bytes(1, out_pad))
    x_bytes = 2 * _phys_bytes(tb, in_size)
    interm_bytes = 4 * _phys_bytes(tb, HIDDEN_PAD) + 2 * _phys_bytes(tb, out_pad)
    headroom = 8 << 20
    budget = _vmem_budget()

    resident_out_bytes = 2 * _phys_bytes(b_pad, out_pad)
    finalize_bytes = 3 * _phys_bytes(b_pad, out_pad)     # temps of the softmax finalize
    need_single = (weight_bytes + x_bytes + interm_bytes + resident_out_bytes
                   + finalize_bytes + headroom)

    use_two_pass = force_two_pass or (need_single > budget)

    flops = 2 * b_pad * (in_size * HIDDEN_PAD + HIDDEN_PAD * HIDDEN_PAD
                         + HIDDEN_PAD * out_pad)
    param_bytes = 4 * (in_size * HIDDEN_PAD + HIDDEN_PAD * HIDDEN_PAD
                       + HIDDEN_PAD * out_pad + 2 * HIDDEN_PAD + out_pad)

    x_spec = pl.BlockSpec((tb, in_size), lambda i: (i, 0))
    weight_specs = [
        pl.BlockSpec((in_size, HIDDEN_PAD), lambda i: (0, 0)),
        pl.BlockSpec((1, HIDDEN_PAD), lambda i: (0, 0)),
        pl.BlockSpec((HIDDEN_PAD, HIDDEN_PAD), lambda i: (0, 0)),
        pl.BlockSpec((1, HIDDEN_PAD), lambda i: (0, 0)),
        pl.BlockSpec((HIDDEN_PAD, out_pad), lambda i: (0, 0)),
        pl.BlockSpec((1, out_pad), lambda i: (0, 0)),
    ]

    if not use_two_pass:
        # -------- single pass: VMEM-resident logits + in-kernel finalize -----
        vmem_limit = int(min(max(need_single, 32 << 20), budget))
        cost = pl.CostEstimate(
            flops=flops,
            transcendentals=b_pad * out_pad,
            bytes_accessed=4 * (b_pad * in_size + b_pad * out_pad) + param_bytes,
        )
        kernel = functools.partial(_resident_softmax_kernel, tb=tb,
                                   b_actual=B, need_mask=need_mask)
        out_padded = pl.pallas_call(
            kernel,
            out_shape=jax.ShapeDtypeStruct((b_pad, out_pad), jnp.float32),
            grid_spec=pltpu.PrefetchScalarGridSpec(
                num_scalar_prefetch=0,
                grid=(nt,),
                in_specs=[x_spec] + weight_specs,
                out_specs=pl.BlockSpec((b_pad, out_pad), lambda i: (0, 0)),
            ),
            compiler_params=pltpu.CompilerParams(
                # Resident output couples all batch tiles -> reduction-style axis.
                dimension_semantics=("arbitrary",),
                vmem_limit_bytes=vmem_limit,
            ),
            cost_estimate=cost,
        )(xp, w1p, b1p, w2p, b2p, w3p, b3p)
    else:
        # -------- pass 1: per-tile logits + softmax partials ("parallel") ----
        need_p1 = (weight_bytes + x_bytes + interm_bytes
                   + 2 * _phys_bytes(tb, out_pad) + 4 * _phys_bytes(8, out_pad)
                   + headroom)
        vmem_p1 = int(min(max(need_p1, 32 << 20), budget))
        cost_p1 = pl.CostEstimate(
            flops=flops,
            transcendentals=b_pad * out_pad,
            bytes_accessed=4 * (b_pad * in_size + b_pad * out_pad
                                + 2 * nt * 8 * out_pad) + param_bytes,
        )
        kernel_p1 = functools.partial(_logits_partials_kernel, tb=tb,
                                      b_actual=B, need_mask=need_mask)
        logits, pmax, psum = pl.pallas_call(
            kernel_p1,
            out_shape=(
                jax.ShapeDtypeStruct((b_pad, out_pad), jnp.float32),
                jax.ShapeDtypeStruct((nt * 8, out_pad), jnp.float32),
                jax.ShapeDtypeStruct((nt * 8, out_pad), jnp.float32),
            ),
            grid_spec=pltpu.PrefetchScalarGridSpec(
                num_scalar_prefetch=0,
                grid=(nt,),
                in_specs=[x_spec] + weight_specs,
                out_specs=[
                    pl.BlockSpec((tb, out_pad), lambda i: (i, 0)),
                    pl.BlockSpec((8, out_pad), lambda i: (i, 0)),
                    pl.BlockSpec((8, out_pad), lambda i: (i, 0)),
                ],
            ),
            compiler_params=pltpu.CompilerParams(
                dimension_semantics=("parallel",),   # both TCs on v7x
                vmem_limit_bytes=vmem_p1,
            ),
            cost_estimate=cost_p1,
        )(xp, w1p, b1p, w2p, b2p, w3p, b3p)

        # Tiny cross-tile combine ((nt, out_pad) elements) as plain XLA ops.
        pm = pmax.reshape(nt, 8, out_pad)[:, 0, :]
        ps = psum.reshape(nt, 8, out_pad)[:, 0, :]
        gm = jnp.max(pm, axis=0, keepdims=True)                       # global col max
        gs = jnp.sum(ps * jnp.exp(pm - gm), axis=0, keepdims=True)    # global sum-exp
        inv_gs = 1.0 / gs

        # -------- pass 2: normalize the logits ("parallel") ------------------
        need_p2 = 4 * _phys_bytes(tb, out_pad) + 4 * _phys_bytes(1, out_pad) + headroom
        vmem_p2 = int(min(max(need_p2, 32 << 20), budget))
        cost_p2 = pl.CostEstimate(
            flops=2 * b_pad * out_pad,
            transcendentals=b_pad * out_pad,
            bytes_accessed=4 * (2 * b_pad * out_pad + 2 * out_pad),
        )
        out_padded = pl.pallas_call(
            _normalize_kernel,
            out_shape=jax.ShapeDtypeStruct((b_pad, out_pad), jnp.float32),
            grid_spec=pltpu.PrefetchScalarGridSpec(
                num_scalar_prefetch=0,
                grid=(nt,),
                in_specs=[
                    pl.BlockSpec((tb, out_pad), lambda i: (i, 0)),
                    pl.BlockSpec((1, out_pad), lambda i: (0, 0)),
                    pl.BlockSpec((1, out_pad), lambda i: (0, 0)),
                ],
                out_specs=pl.BlockSpec((tb, out_pad), lambda i: (i, 0)),
            ),
            compiler_params=pltpu.CompilerParams(
                dimension_semantics=("parallel",),
                vmem_limit_bytes=vmem_p2,
            ),
            cost_estimate=cost_p2,
        )(logits, gm, inv_gs)

    return out_padded[:B, :output_size]


# --------------------------------------------------------------------------- #
# Reference + init
# --------------------------------------------------------------------------- #
def init_params(key, input_size, output_size, hidden=HIDDEN):
    """Deterministic init mimicking PyTorch nn.Linear default:
    U(-1/sqrt(fan_in), 1/sqrt(fan_in)) for both weight and bias."""
    ks = jax.random.split(key, 6)

    def linear(kw, kb, fan_in, fan_out):
        bound = 1.0 / jnp.sqrt(jnp.float32(fan_in))
        w = jax.random.uniform(kw, (fan_in, fan_out), jnp.float32, -bound, bound)
        b = jax.random.uniform(kb, (1, fan_out), jnp.float32, -bound, bound)
        return w, b

    w1, b1 = linear(ks[0], ks[1], input_size, hidden)
    w2, b2 = linear(ks[2], ks[3], hidden, hidden)
    w3, b3 = linear(ks[4], ks[5], hidden, output_size)
    return (w1, b1, w2, b2, w3, b3)


def reference_forward(x, params):
    w1, b1, w2, b2, w3, b3 = params
    h1 = jnp.maximum(x @ w1 + b1, 0.0)
    h2 = jnp.maximum(h1 @ w2 + b2, 0.0)
    logits = h2 @ w3 + b3
    return jax.nn.softmax(logits, axis=0)   # dim=0, matching the torch code


if __name__ == "__main__":
    batch = 2
    input_size = 8
    output_size = 4

    key = jax.random.PRNGKey(0)
    k_x, k_p = jax.random.split(key)
    x = jax.random.normal(k_x, (batch, input_size), dtype=jnp.float32)
    params = init_params(k_p, input_size, output_size)
    prepared = prepare_params(params)       # pad weights once, reuse every call

    out = jax.block_until_ready(network_forward(x, prepared, output_size=output_size))
    ref = reference_forward(x, params)
    assert out.shape == (batch, output_size), out.shape
    assert jnp.allclose(out, ref, atol=1e-5, rtol=1e-5), (out, ref)

    # Multi-tile batch: exercises the cross-tile dim-0 softmax of the
    # single-pass (resident-output, "arbitrary" axis) design.
    big_batch = 600                          # tb=512 -> b_pad=1024, grid=(2,)
    xb = jax.random.normal(jax.random.PRNGKey(1), (big_batch, input_size),
                           dtype=jnp.float32)
    out_b = jax.block_until_ready(
        network_forward(xb, prepared, output_size=output_size))
    ref_b = reference_forward(xb, params)
    assert out_b.shape == (big_batch, output_size)
    assert jnp.allclose(out_b, ref_b, atol=1e-5, rtol=1e-5)

    # Same batch through the two-pass ("parallel" grid) path used for large
    # batches / v7x's 64 MiB VMEM, to verify the partial-softmax combine.
    out_c = jax.block_until_ready(
        network_forward(xb, prepared, output_size=output_size, force_two_pass=True))
    assert out_c.shape == (big_batch, output_size)
    assert jnp.allclose(out_c, ref_b, atol=1e-5, rtol=1e-5)

    print("KERNEL_OK")
</pallas_src>

<mosaic_0001>
module attributes {stable_mosaic.version = 11 : i64} {
  func.func @_resident_softmax_kernel(%arg0: i32, %arg1: memref<8x8xf32, #tpu.memory_space<vmem>>, %arg2: memref<8x128xf32, #tpu.memory_space<vmem>>, %arg3: memref<1x128xf32, #tpu.memory_space<vmem>>, %arg4: memref<128x128xf32, #tpu.memory_space<vmem>>, %arg5: memref<1x128xf32, #tpu.memory_space<vmem>>, %arg6: memref<128x128xf32, #tpu.memory_space<vmem>>, %arg7: memref<1x128xf32, #tpu.memory_space<vmem>>, %arg8: memref<8x128xf32, #tpu.memory_space<vmem>>) attributes {dimension_semantics = [#tpu.dimension_semantics<arbitrary>], iteration_bounds = array<i64: 1>, scalar_prefetch = 0 : i64, scratch_operands = 0 : i64, tpu.core_type = #tpu.core_type<tc>, window_params = [{transform_indices = @transform_0, window_bounds = array<i64: 8, 8>}, {pipeline_mode = #tpu.pipeline_mode<synchronous>, transform_indices = @transform_1, window_bounds = array<i64: 8, 128>}, {pipeline_mode = #tpu.pipeline_mode<synchronous>, transform_indices = @transform_2, window_bounds = array<i64: 1, 128>}, {pipeline_mode = #tpu.pipeline_mode<synchronous>, transform_indices = @transform_3, window_bounds = array<i64: 128, 128>}, {pipeline_mode = #tpu.pipeline_mode<synchronous>, transform_indices = @transform_4, window_bounds = array<i64: 1, 128>}, {pipeline_mode = #tpu.pipeline_mode<synchronous>, transform_indices = @transform_5, window_bounds = array<i64: 128, 128>}, {pipeline_mode = #tpu.pipeline_mode<synchronous>, transform_indices = @transform_6, window_bounds = array<i64: 1, 128>}, {pipeline_mode = #tpu.pipeline_mode<synchronous>, transform_indices = @transform_7, window_bounds = array<i64: 8, 128>}]} {
    %c0 = arith.constant 0 : index
    %c0_0 = arith.constant 0 : index
    %0 = vector.load %arg1[%c0, %c0_0] : memref<8x8xf32, #tpu.memory_space<vmem>>, vector<8x8xf32>
    %c0_1 = arith.constant 0 : index
    %c0_2 = arith.constant 0 : index
    %1 = vector.load %arg2[%c0_1, %c0_2] : memref<8x128xf32, #tpu.memory_space<vmem>>, vector<8x128xf32>
    %cst = arith.constant dense<0.000000e+00> : vector<8x128xf32>
    %2 = tpu.matmul %0, %1, %cst {dimension_numbers = #tpu.dot_dimension_numbers<[1], [0], [0], [1], [0, 0, 1, 1], [], []>} : vector<8x8xf32>, vector<8x128xf32>, vector<8x128xf32> -> vector<8x128xf32>
    %c0_3 = arith.constant 0 : index
    %c0_4 = arith.constant 0 : index
    %3 = vector.load %arg3[%c0_3, %c0_4] : memref<1x128xf32, #tpu.memory_space<vmem>>, vector<1x128xf32>
    %4 = vector.broadcast %3 : vector<1x128xf32> to vector<8x128xf32>
    %5 = arith.addf %2, %4 : vector<8x128xf32>
    %cst_5 = arith.constant 0.000000e+00 : f32
    %6 = vector.broadcast %cst_5 : f32 to vector<8x128xf32>
    %7 = arith.maximumf %5, %6 : vector<8x128xf32>
    %c0_6 = arith.constant 0 : index
    %c0_7 = arith.constant 0 : index
    %8 = vector.load %arg4[%c0_6, %c0_7] : memref<128x128xf32, #tpu.memory_space<vmem>>, vector<128x128xf32>
    %cst_8 = arith.constant dense<0.000000e+00> : vector<8x128xf32>
    %9 = tpu.matmul %7, %8, %cst_8 {dimension_numbers = #tpu.dot_dimension_numbers<[1], [0], [0], [1], [0, 0, 1, 1], [], []>} : vector<8x128xf32>, vector<128x128xf32>, vector<8x128xf32> -> vector<8x128xf32>
    %c0_9 = arith.constant 0 : index
    %c0_10 = arith.constant 0 : index
    %10 = vector.load %arg5[%c0_9, %c0_10] : memref<1x128xf32, #tpu.memory_space<vmem>>, vector<1x128xf32>
    %11 = vector.broadcast %10 : vector<1x128xf32> to vector<8x128xf32>
    %12 = arith.addf %9, %11 : vector<8x128xf32>
    %cst_11 = arith.constant 0.000000e+00 : f32
    %13 = vector.broadcast %cst_11 : f32 to vector<8x128xf32>
    %14 = arith.maximumf %12, %13 : vector<8x128xf32>
    %c0_12 = arith.constant 0 : index
    %c0_13 = arith.constant 0 : index
    %15 = vector.load %arg6[%c0_12, %c0_13] : memref<128x128xf32, #tpu.memory_space<vmem>>, vector<128x128xf32>
    %cst_14 = arith.constant dense<0.000000e+00> : vector<8x128xf32>
    %16 = tpu.matmul %14, %15, %cst_14 {dimension_numbers = #tpu.dot_dimension_numbers<[1], [0], [0], [1], [0, 0, 1, 1], [], []>} : vector<8x128xf32>, vector<128x128xf32>, vector<8x128xf32> -> vector<8x128xf32>
    %c0_15 = arith.constant 0 : index
    %c0_16 = arith.constant 0 : index
    %17 = vector.load %arg7[%c0_15, %c0_16] : memref<1x128xf32, #tpu.memory_space<vmem>>, vector<1x128xf32>
    %18 = vector.broadcast %17 : vector<1x128xf32> to vector<8x128xf32>
    %19 = arith.addf %16, %18 : vector<8x128xf32>
    %20 = tpu.iota {dimensions = array<i32: 0>} : vector<8x128xi32>
    %c8_i32 = arith.constant 8 : i32
    %21 = arith.muli %arg0, %c8_i32 : i32
    %22 = vector.broadcast %21 : i32 to vector<8x128xi32>
    %23 = arith.addi %20, %22 : vector<8x128xi32>
    %c2_i32 = arith.constant 2 : i32
    %24 = vector.broadcast %c2_i32 : i32 to vector<8x128xi32>
    %25 = arith.cmpi slt, %23, %24 : vector<8x128xi32>
    %cst_17 = arith.constant 0xFF800000 : f32
    %26 = vector.broadcast %cst_17 : f32 to vector<8x128xf32>
    %27 = arith.select %25, %19, %26 : vector<8x128xi1>, vector<8x128xf32>
    %c8_i32_18 = arith.constant 8 : i32
    %28 = arith.muli %arg0, %c8_i32_18 : i32
    %29 = tpu.assume_multiple %28, 8 : i32
    %30 = arith.index_cast %29 : i32 to index
    %c0_19 = arith.constant 0 : index
    %31 = vector.load %arg8[%30, %c0_19] : memref<8x128xf32, #tpu.memory_space<vmem>>, vector<8x128xf32>
    tpu.vector_store %arg8[%30, %c0_19], %27 {strides = array<i32>} : memref<8x128xf32, #tpu.memory_space<vmem>>, vector<8x128xf32>,
    %c0_i32 = arith.constant 0 : i32
    %32 = arith.cmpi eq, %arg0, %c0_i32 : i32
    %33 = arith.extui %32 : i1 to i32
    %c0_i32_20 = arith.constant 0 : i32
    %34 = arith.cmpi ne, %33, %c0_i32_20 : i32
    scf.if %34 {
      %c0_21 = arith.constant 0 : index
      %c0_22 = arith.constant 0 : index
      %35 = vector.load %arg8[%c0_21, %c0_22] : memref<8x128xf32, #tpu.memory_space<vmem>>, vector<8x128xf32>
      %cst_23 = arith.constant dense<0xFF800000> : vector<128xf32>
      %36 = vector.multi_reduction <maximumf>, %35, %cst_23 [0] : vector<8x128xf32> to vector<128xf32>
      %37 = vector.shape_cast %36 : vector<128xf32> to vector<1x128xf32>
      %38 = vector.broadcast %37 : vector<1x128xf32> to vector<8x128xf32>
      %39 = arith.subf %35, %38 : vector<8x128xf32>
      %40 = math.exp %39 : vector<8x128xf32>
      %cst_24 = arith.constant dense<0.000000e+00> : vector<128xf32>
      %41 = vector.multi_reduction <add>, %40, %cst_24 [0] : vector<8x128xf32> to vector<128xf32>
      %42 = vector.shape_cast %41 : vector<128xf32> to vector<1x128xf32>
      %43 = tpu.reciprocal %42 : vector<1x128xf32> -> vector<1x128xf32>
      %44 = vector.broadcast %43 : vector<1x128xf32> to vector<8x128xf32>
      %45 = arith.mulf %40, %44 : vector<8x128xf32>
      %c0_25 = arith.constant 0 : index
      %c0_26 = arith.constant 0 : index
      %46 = vector.load %arg8[%c0_25, %c0_26] : memref<8x128xf32, #tpu.memory_space<vmem>>, vector<8x128xf32>
      tpu.vector_store %arg8[%c0_25, %c0_26], %45 {strides = array<i32>} : memref<8x128xf32, #tpu.memory_space<vmem>>, vector<8x128xf32>,
    } else {
    }
    return
  }
  func.func @transform_0(%arg0: i32) -> (i32, i32) {
    %c0_i32 = arith.constant 0 : i32
    %c0_i32_0 = arith.constant 0 : i32
    return %arg0, %c0_i32 : i32, i32
  }
  func.func @transform_1(%arg0: i32) -> (i32, i32) {
    %c0_i32 = arith.constant 0 : i32
    %c0_i32_0 = arith.constant 0 : i32
    %c0_i32_1 = arith.constant 0 : i32
    return %c0_i32, %c0_i32_0 : i32, i32
  }
  func.func @transform_2(%arg0: i32) -> (i32, i32) {
    %c0_i32 = arith.constant 0 : i32
    %c0_i32_0 = arith.constant 0 : i32
    %c0_i32_1 = arith.constant 0 : i32
    return %c0_i32, %c0_i32_0 : i32, i32
  }
  func.func @transform_3(%arg0: i32) -> (i32, i32) {
    %c0_i32 = arith.constant 0 : i32
    %c0_i32_0 = arith.constant 0 : i32
    %c0_i32_1 = arith.constant 0 : i32
    return %c0_i32, %c0_i32_0 : i32, i32
  }
  func.func @transform_4(%arg0: i32) -> (i32, i32) {
    %c0_i32 = arith.constant 0 : i32
    %c0_i32_0 = arith.constant 0 : i32
    %c0_i32_1 = arith.constant 0 : i32
    return %c0_i32, %c0_i32_0 : i32, i32
  }
  func.func @transform_5(%arg0: i32) -> (i32, i32) {
    %c0_i32 = arith.constant 0 : i32
    %c0_i32_0 = arith.constant 0 : i32
    %c0_i32_1 = arith.constant 0 : i32
    return %c0_i32, %c0_i32_0 : i32, i32
  }
  func.func @transform_6(%arg0: i32) -> (i32, i32) {
    %c0_i32 = arith.constant 0 : i32
    %c0_i32_0 = arith.constant 0 : i32
    %c0_i32_1 = arith.constant 0 : i32
    return %c0_i32, %c0_i32_0 : i32, i32
  }
  func.func @transform_7(%arg0: i32) -> (i32, i32) {
    %c0_i32 = arith.constant 0 : i32
    %c0_i32_0 = arith.constant 0 : i32
    %c0_i32_1 = arith.constant 0 : i32
    return %c0_i32, %c0_i32_0 : i32, i32
  }
}

</mosaic_0001>

<bundles_post_ra>
// kernel: network_forward.1
= control target key start
LH: loop header
LB: loop body
LE: loop exit
PB: predicated region body
PF: predicated region fallthrough
CT: control target
= control target key end

     0   :  { %12 = vsyncpa [#allocation3], 0  ;;  %s693_s0 = inlined_call_operand.vmem [shape: f32[8,8], index: 0, kind: input, shape index: {}]   ;;  %s694_s1 = inlined_call_operand.vmem [shape: f32[8,128], index: 1, kind: input, shape index: {}]   ;;  %s695_s2 = inlined_call_operand.vmem [shape: f32[1,128], index: 2, kind: input, shape index: {}]   ;;  %s696_s3 = inlined_call_operand.hbm [shape: f32[128,128], index: 3, kind: input, shape index: {}]   ;;  %s697_s4 = inlined_call_operand.vmem [shape: f32[1,128], index: 4, kind: input, shape index: {}]   ;;  %s698_s5 = inlined_call_operand.hbm [shape: f32[128,128], index: 5, kind: input, shape index: {}]   ;;  %s699_s6 = inlined_call_operand.vmem [shape: f32[1,128], index: 6, kind: input, shape index: {}]   ;;  %s700_s7 = inlined_call_operand.vmem [shape: f32[8,128], index: 7, kind: output, shape index: {}]  }
   0x1   :  { %13 = vsyncpa [#allocation5], 0  ;;  %s585_s24 = smov [#allocation2]   ;;  %s537_s28 = scalar_lea.hbm %s696_s3, 2048 }
   0x2   :  { %s25_s25 = sshll.u32 %s585_s24, 4  ;;  %p538_p0 = scmp.ne.s32.totalorder %s696_s3, %s537_s28  ;;  %s26_s25 = int_to_ptr.vmem [resolvable:$true] %s25_s25 }
   0x3   :  { %p541_p1 = scmp.lt.u32.totalorder %s537_s28, %s696_s3 }
   0x5   :  { %p543_p2 = pnand %p541_p1, %p538_p0 }
   0x7   :  { %546 = shalt.err (!%p543_p2)
}
   0x8   :  { %s547_s10 = scalar_lea.vmem %s26_s25, 2048  ;;  %p552_p4 = scmp.lt.s32.totalorder %s26_s25, %s26_s25 }
   0x9   :  { %p548_p3 = scmp.ne.s32.totalorder %s26_s25, %s547_s10  ;;  %p553_p5 = scmp.lt.s32.totalorder %s547_s10, %s547_s10 }
   0xb   :  { %p554_p6 = por %p553_p5, %p552_p4 }
   0xd   :  { %p555_p7 = pnand %p554_p6, %p548_p3 }
   0xf   :  { %558 = shalt.err (!%p555_p7)
}
  0x10   :  { %s586_s11 = smov 128   ;;  %s587_s12 = smov 8  }
  0x11   :  { %31 = dma.hbm_to_vmem [thread:$0]  %s696_s3, 2048, %s26_s25, [#allocation3], %s586_s11, %s586_s11, %s587_s12  }
  0x12   :  { %s588_s15 = smov [#allocation4]   ;;  %s559_s19 = scalar_lea.hbm %s698_s5, 2048 }
  0x13   :  { %s39_s16 = sshll.u32 %s588_s15, 4  ;;  %p560_p8 = scmp.ne.s32.totalorder %s698_s5, %s559_s19  ;;  %s40_s16 = int_to_ptr.vmem [resolvable:$true] %s39_s16 }
  0x14   :  { %p563_p9 = scmp.lt.u32.totalorder %s559_s19, %s698_s5 }
  0x16   :  { %p565_p10 = pnand %p563_p9, %p560_p8 }
  0x18   :  { %568 = shalt.err (!%p565_p10)
}
  0x19   :  { %s569_s24 = scalar_lea.vmem %s40_s16, 2048  ;;  %p574_p12 = scmp.lt.s32.totalorder %s40_s16, %s40_s16 }
  0x1a   :  { %p570_p11 = scmp.ne.s32.totalorder %s40_s16, %s569_s24  ;;  %p575_p13 = scmp.lt.s32.totalorder %s569_s24, %s569_s24 }
  0x1c   :  { %p576_p0 = por %p575_p13, %p574_p12 }
  0x1e   :  { %p577_p1 = pnand %p576_p0, %p570_p11 }
  0x20   :  { %580 = shalt.err (!%p577_p1)
}
  0x21   :  { %45 = dma.hbm_to_vmem [thread:$0]  %s698_s5, 2048, %s40_s16, [#allocation5], %s586_s11, %s586_s11, %s587_s12  }
  0x22   :  { %581 = dma.done.wait [#allocation3], 2048  }
  0x23   :  { %582 = vsyncadd [#allocation3], 4294965248 }
  0x24   :  { %583 = dma.done.wait [#allocation5], 2048  }
  0x25   :  { %584 = vsyncadd [#allocation5], 4294965248  ;;  %v589_v0 = vmov 0.0   ;;  %vm590_vm0 = vmmov 0   ;;  %v591_v1 = vmov 0.0|0.0   ;;  %vm63_vm1 = vcmask 64512  }
  0x26   :  { %403 = vmatprep.subr.mxu0 %v589_v0  ;;  %405 = vmatprep.mubr.msk.f32.mxu0 %vm590_vm0, %v589_v0  ;;  %v55_v2 = vld [vmem:[%s694_s1] sm:$0xff]  ;;  %v139_v5 = vld [vmem:[#allocation2 + $0x8] sm:$0xff]  ;;  %v140_v6 = vld [vmem:[#allocation2 + $0x10] sm:$0xff]  ;;  %v325_v62 = vlaneseq }
  0x27   :  { %478 = vmatprep.subr.bf16.mxu1 %v591_v1  ;;  %440 = vmatprep.mubr.msk.f32.mxu1 %vm590_vm0, %v589_v0  ;;  %v54_v3 = vld [vmem:[%s693_s0] sm:$0xff]  ;;  %v141_v7 = vld [vmem:[#allocation2 + $0x18] sm:$0xff]  ;;  %v143_v11 = vld [vmem:[#allocation2 + $0x28] sm:$0xff] }
  0x28   :  { %v138_v4 = vld [vmem:[#allocation2] sm:$0xff]  ;;  %404 = vmatpush3.msra.mxu0 %v55_v2  ;;  %v482_v9 = vpack.c.bf16 %v141_v7, %v140_v6  ;;  %v144_v13 = vld [vmem:[#allocation2 + $0x30] sm:$0xff]  ;;  %v145_v14 = vld [vmem:[#allocation2 + $0x38] sm:$0xff]  ;;  %v326_v63 = vshrl.u32 %v325_v62, 7 }
  0x29   :  { %406 = vmatmul.mubr.msk.f32.vlgmr.msra.gmra.mrb[0].mxu0 %vm63_vm1, %v54_v3  ;;  %v479_v8 = vpack.c.bf16 %v139_v5, %v138_v4  ;;  %502 = vmatprep.subr.bf16.mxu0 %v591_v1  ;;  %v142_v10 = vld [vmem:[#allocation2 + $0x20] sm:$0xff]  ;;  %v488_v15 = vpack.c.bf16 %v145_v14, %v144_v13  ;;  %v147_v17 = vld [vmem:[#allocation2 + $0x48] sm:$0xff]  ;;  %v148_v19 = vld [vmem:[#allocation2 + $0x50] sm:$0xff] }
  0x2a   :  { %475 = vmatprep.mubr.msk.f32.mxu0 %vm590_vm0, %v589_v0  ;;  %v485_v12 = vpack.c.bf16 %v143_v11, %v142_v10  ;;  %v146_v16 = vld [vmem:[#allocation2 + $0x40] sm:$0xff]  ;;  %v149_v20 = vld [vmem:[#allocation2 + $0x58] sm:$0xff]  ;;  %v151_v23 = vld [vmem:[#allocation2 + $0x68] sm:$0xff]  ;;  %vm330_vm2 = vcmp.lt.s32.totalorder %v326_v63, 2 }
  0x2b   :  { %480 = vmatpush3.bf16.msra.mxu1 %v479_v8  ;;  %v491_v18 = vpack.c.bf16 %v147_v17, %v146_v16  ;;  %v494_v21 = vpack.c.bf16 %v149_v20, %v148_v19  ;;  %v150_v22 = vld [vmem:[#allocation2 + $0x60] sm:$0xff]  ;;  %v152_v25 = vld [vmem:[#allocation2 + $0x70] sm:$0xff]  ;;  %v153_v26 = vld [vmem:[#allocation2 + $0x78] sm:$0xff] }
  0x2c   :  { %481 = vmatprep.subr.bf16.mxu1 %v591_v1  ;;  %v497_v24 = vpack.c.bf16 %v151_v23, %v150_v22  ;;  %v500_v27 = vpack.c.bf16 %v153_v26, %v152_v25  ;;  %v232_v28 = vld [vmem:[#allocation4] sm:$0xff]  ;;  %v233_v29 = vld [vmem:[#allocation4 + $0x8] sm:$0xff]  ;;  %v234_v30 = vld [vmem:[#allocation4 + $0x10] sm:$0xff] }
  0x2d   :  { %v503_v31 = vpack.c.bf16 %v233_v29, %v232_v28  ;;  %v235_v32 = vld [vmem:[#allocation4 + $0x18] sm:$0xff]  ;;  %v236_v34 = vld [vmem:[#allocation4 + $0x20] sm:$0xff]  ;;  %v237_v35 = vld [vmem:[#allocation4 + $0x28] sm:$0xff] }
  0x2e   :  { %v506_v33 = vpack.c.bf16 %v235_v32, %v234_v30  ;;  %v509_v36 = vpack.c.bf16 %v237_v35, %v236_v34  ;;  %v238_v37 = vld [vmem:[#allocation4 + $0x30] sm:$0xff]  ;;  %v239_v38 = vld [vmem:[#allocation4 + $0x38] sm:$0xff]  ;;  %v240_v40 = vld [vmem:[#allocation4 + $0x40] sm:$0xff] }
  0x2f   :  { %483 = vmatpush3.bf16.msra.mxu1 %v482_v9  ;;  %504 = vmatpush3.bf16.msra.mxu0 %v503_v31  ;;  %v512_v39 = vpack.c.bf16 %v239_v38, %v238_v37  ;;  %v241_v41 = vld [vmem:[#allocation4 + $0x48] sm:$0xff]  ;;  %v242_v43 = vld [vmem:[#allocation4 + $0x50] sm:$0xff]  ;;  %v243_v44 = vld [vmem:[#allocation4 + $0x58] sm:$0xff] }
  0x30   :  { %484 = vmatprep.subr.bf16.mxu1 %v591_v1  ;;  %505 = vmatprep.subr.bf16.mxu0 %v591_v1  ;;  %v515_v42 = vpack.c.bf16 %v241_v41, %v240_v40  ;;  %v518_v45 = vpack.c.bf16 %v243_v44, %v242_v43  ;;  %v244_v46 = vld [vmem:[#allocation4 + $0x60] sm:$0xff]  ;;  %v245_v47 = vld [vmem:[#allocation4 + $0x68] sm:$0xff]  ;;  %v246_v54 = vld [vmem:[#allocation4 + $0x70] sm:$0xff] }
  0x31   :  { %v521_v48 = vpack.c.bf16 %v245_v47, %v244_v46  ;;  %v363_v49 = vld [vmem:[%s695_s2] ss:$0 sm:$0xff]  ;;  %v247_v55 = vld [vmem:[#allocation4 + $0x78] sm:$0xff] }
  0x32   :  { %v524_v56 = vpack.c.bf16 %v247_v55, %v246_v54  ;;  %v365_v57 = vld [vmem:[%s697_s4] ss:$0 sm:$0xff] }
  0x33   :  { %486 = vmatpush3.bf16.msra.mxu1 %v485_v12  ;;  %507 = vmatpush3.bf16.msra.mxu0 %v506_v33  ;;  %v366_v0 = vld [vmem:[%s699_s6] ss:$0 sm:$0xff] }
  0x34   :  { %487 = vmatprep.subr.bf16.mxu1 %v591_v1  ;;  %508 = vmatprep.subr.bf16.mxu0 %v591_v1 }
  0x37   :  { %489 = vmatpush3.bf16.msra.mxu1 %v488_v15  ;;  %510 = vmatpush3.bf16.msra.mxu0 %v509_v36 }
  0x38   :  { %490 = vmatprep.subr.bf16.mxu1 %v591_v1  ;;  %511 = vmatprep.subr.bf16.mxu0 %v591_v1 }
  0x3b   :  { %492 = vmatpush3.bf16.msra.mxu1 %v491_v18  ;;  %513 = vmatpush3.bf16.msra.mxu0 %v512_v39 }
  0x3c   :  { %493 = vmatprep.subr.bf16.mxu1 %v591_v1  ;;  %514 = vmatprep.subr.bf16.mxu0 %v591_v1 }
  0x3f   :  { %495 = vmatpush3.bf16.msra.mxu1 %v494_v21  ;;  %516 = vmatpush3.bf16.msra.mxu0 %v515_v42 }
  0x40   :  { %496 = vmatprep.subr.bf16.mxu1 %v591_v1  ;;  %517 = vmatprep.subr.bf16.mxu0 %v591_v1 }
  0x43   :  { %498 = vmatpush3.bf16.msra.mxu1 %v497_v24  ;;  %519 = vmatpush3.bf16.msra.mxu0 %v518_v45 }
  0x44   :  { %499 = vmatprep.subr.bf16.mxu1 %v591_v1  ;;  %520 = vmatprep.subr.bf16.mxu0 %v591_v1 }
  0x47   :  { %501 = vmatpush3.bf16.msra.mxu1 %v500_v27  ;;  %522 = vmatpush3.bf16.msra.mxu0 %v521_v48 }
  0x48   :  { %523 = vmatprep.subr.bf16.mxu0 %v591_v1 }
  0x4b   :  { %525 = vmatpush3.bf16.msra.mxu0 %v524_v56 }
  0xfc   :  { %v133_v50 = vpop.f32.mrb[0].mxu0 }
  0xfd   :  { %v134_v51 = vadd.f32 %v363_v49, %v133_v50  ;;  %v407_v52 = vpop.f32.mrb[1].mxu0 }
  0xff   :  { %v137_v53 = vmax.f32 %v134_v51, 0.0 }
 0x101   :  { %441 = vmatmul.mubr.f32.vlgmr.msra.gmra.mrb[0].mxu1 %v137_v53 }
 0x1d4   :  { %v227_v58 = vpop.f32.mrb[0].mxu1 }
 0x1d5   :  { %v228_v59 = vadd.f32 %v365_v57, %v227_v58  ;;  %v442_v60 = vpop.f32.mrb[1].mxu1 }
 0x1d7   :  { %v231_v61 = vmax.f32 %v228_v59, 0.0 }
 0x1d9   :  { %476 = vmatmul.mubr.f32.vlgmr.msra.gmra.mrb[2].mxu0 %v231_v61 }
 0x2ac   :  { %v321_v1 = vpop.f32.mrb[2].mxu0 }
 0x2ad   :  { %v322_v2 = vadd.f32 %v366_v0, %v321_v1  ;;  %v477_v3 = vpop.f32.mrb[3].mxu0 }
 0x2af   :  { %v331_v4 = vsel %vm330_vm2, %v322_v2, -inf }
 0x2b0   :  { %v339_v5 = vrot.slane %v331_v4, 4 }
 0x2b2   :  { %v340_v6 = vmax.f32 %v331_v4, %v339_v5 }
 0x2b4   :  { %v341_v7 = vrot.slane %v340_v6, 2 }
 0x2b6   :  { %v342_v8 = vmax.f32 %v340_v6, %v341_v7 }
 0x2b8   :  { %v343_v9 = vrot.slane %v342_v8, 1 }
 0x2ba   :  { %v344_v10 = vmax.f32 %v342_v8, %v343_v9 }
 0x2bc   :  { %v345_v11 = vsub.f32 %v331_v4, %v344_v10 }
 0x2be   :  { %v346_v12 = vmul.f32 1.442695, %v345_v11 }
 0x2c0   :  { %533 = vpow2.f32 %v346_v12 }
 0x2ca   :  { %v534_v13 = vpop.eup %533 }
 0x2cb   :  { %v348_v14 = vrot.slane %v534_v13, 4 }
 0x2cd   :  { %v349_v15 = vadd.f32 %v534_v13, %v348_v14 }
 0x2cf   :  { %v350_v16 = vrot.slane %v349_v15, 2 }
 0x2d1   :  { %v351_v17 = vadd.f32 %v350_v16, %v349_v15 }
 0x2d3   :  { %v352_v18 = vrot.slane %v351_v17, 1 }
 0x2d5   :  { %v353_v19 = vadd.f32 %v352_v18, %v351_v17 }
 0x2d7   :  { %535 = vrcp.f32 %v353_v19 }
 0x2e1   :  { %v536_v20 = vpop.eup %535 }
 0x2e2   :  { %v355_v21 = vmul.f32 %v536_v20, %v534_v13 }
 0x2e4   :  { %356 = vst [vmem:[%s700_s7] sm:$0xff] %v355_v21 }
 0x2e5   :  { %361 = vsyncpa [#allocation3], 1 }
 0x2e6   :  { %362 = vsyncpa [#allocation5], 1 }

</bundles_post_ra>
